<compile_context>
chip_gen: v5e
topology: v5e:2x2
jax: 0.10.0
libtpu: 0.0.40
codegen_flags: <defaults>
</compile_context>

<pallas_src>
import functools

import jax
import jax.numpy as jnp
from jax.experimental import pallas as pl
from jax.experimental.pallas import tpu as pltpu


def _decomp_packed_kernel(xtype_ref, x_ref, w_ref, o_ref, *, num_transforms, output_dim):
    # One lane-dense MXU matmul against the lane-packed weights: (TILE_N, Din) @ (Din, T*Dout)
    y = jnp.dot(x_ref[...], w_ref[...], preferred_element_type=jnp.float32)

    # Exact one-hot selection of each row's Dout-wide slab (f32 epilogue — safe on v5e too).
    xt = xtype_ref[...]                                       # (TILE_N, 1) int32
    out = jnp.where(xt == 0, y[:, 0:output_dim], 0.0)
    for t in range(1, num_transforms):
        lo = t * output_dim
        out = out + jnp.where(xt == t, y[:, lo:lo + output_dim], 0.0)

    o_ref[...] = out.astype(o_ref.dtype)


def _choose_tile_n(n):
    # Big tiles amortize the ~0.35 us/grid-step overhead; small problems collapse to one step.
    for cand in (1024, 512, 256, 128, 64, 32, 16, 8):
        if n >= cand:
            return cand
    return 8


def decomp_multi_transform(x, xtype, params, *, input_dim, output_dim,
                           num_transforms, num_bases, bias=None, use_bf16=False):
    """Forward pass of DecompMultiTransform with regularizer='basis', long xtype."""
    del num_bases  # weight reconstruction is hoisted; basis count is implicit in params
    x_shape = x.shape
    x_flat = x.reshape(-1, input_dim)
    n = x_flat.shape[0]
    xtype_flat = xtype.reshape(-1, 1).astype(jnp.int32)       # (N, 1)

    # Hoisted weight reconstruction: tiny (T,B)@(B,Din*Dout) matmul, bit-identical to
    # the reference th.matmul(w_comp, weight) path.
    w_comp = params["w_comp"].astype(jnp.float32)             # (T, B)
    basis = params["weight"].astype(jnp.float32)              # (B, Din*Dout)
    w_all = (w_comp @ basis).reshape(num_transforms, input_dim, output_dim)
    # Lane-packed weights: columns [t*Dout, (t+1)*Dout) hold W_t.
    w_packed = jnp.transpose(w_all, (1, 0, 2)).reshape(
        input_dim, num_transforms * output_dim)               # (Din, T*Dout)

    compute_dtype = jnp.bfloat16 if use_bf16 else jnp.float32
    x_flat = x_flat.astype(compute_dtype)
    w_packed = w_packed.astype(compute_dtype)

    # Tile the row dimension; pad N up to a multiple of the tile (padded rows discarded).
    tile_n = _choose_tile_n(n)
    n_pad = pl.cdiv(n, tile_n) * tile_n
    if n_pad != n:
        x_flat = jnp.pad(x_flat, ((0, n_pad - n), (0, 0)))
        xtype_flat = jnp.pad(xtype_flat, ((0, n_pad - n), (0, 0)))

    kernel = functools.partial(_decomp_packed_kernel,
                               num_transforms=num_transforms, output_dim=output_dim)

    out = pl.pallas_call(
        kernel,
        out_shape=jax.ShapeDtypeStruct((n_pad, output_dim), jnp.float32),
        grid=(n_pad // tile_n,),
        in_specs=[
            pl.BlockSpec((tile_n, 1), lambda i: (i, 0)),                   # xtype
            pl.BlockSpec((tile_n, input_dim), lambda i: (i, 0)),           # x
            pl.BlockSpec((input_dim, num_transforms * output_dim),
                         lambda i: (0, 0)),                                # packed W (resident)
        ],
        out_specs=pl.BlockSpec((tile_n, output_dim), lambda i: (i, 0)),
        compiler_params=pltpu.CompilerParams(
            dimension_semantics=("parallel",)),                # megacore-shardable on v7x
    )(xtype_flat, x_flat, w_packed)

    out = out[:n]
    if bias is not None:
        out = out + bias
    return out.reshape(x_shape[:-1] + (output_dim,))


def _reference(x, xtype, params, *, input_dim, output_dim, num_transforms, num_bases):
    """Pure-JAX reference matching the PyTorch 'basis' branch (N >= num_transforms)."""
    del num_bases
    x_shape = x.shape
    x_flat = x.reshape(-1, input_dim).astype(jnp.float32)
    weight = params["w_comp"] @ params["weight"]                  # (T, Din*Dout)
    w_all = weight.reshape(num_transforms, input_dim, output_dim)
    w_sel = w_all[xtype.reshape(-1)]                              # (N, Din, Dout)
    out = jnp.einsum("nd,ndo->no", x_flat, w_sel)
    return out.reshape(x_shape[:-1] + (output_dim,))


if __name__ == "__main__":
    # Module config (small, consistent with the forward pass).
    input_dim = 32
    output_dim = 32
    num_transforms = 4
    num_bases = 2          # > 0 -> regularizer stays 'basis'
    # bias=False (default) -> no bias parameter.

    key = jax.random.PRNGKey(0)
    k_basis, k_comp, k_x, k_t = jax.random.split(key, 4)

    # Parameter shapes from create_decomposed_weights for 'basis':
    #   weight : (num_bases, input_dim * output_dim)
    #   w_comp : (num_transforms, num_bases)
    params = {
        "weight": jax.random.normal(k_basis, (num_bases, input_dim * output_dim),
                                    dtype=jnp.float32) * 0.1,
        "w_comp": jax.random.normal(k_comp, (num_transforms, num_bases),
                                    dtype=jnp.float32) * 0.1,
    }

    # Example inputs: x is (batch=2, seq=8, input_dim), xtype is long-valued (2, 8).
    x = jax.random.normal(k_x, (2, 8, input_dim), dtype=jnp.float32)
    xtype = jax.random.randint(k_t, (2, 8), 0, num_transforms, dtype=jnp.int32)

    out = decomp_multi_transform(
        x, xtype, params,
        input_dim=input_dim, output_dim=output_dim,
        num_transforms=num_transforms, num_bases=num_bases, bias=None)
    out = jax.block_until_ready(out)

    ref = _reference(x, xtype, params,
                     input_dim=input_dim, output_dim=output_dim,
                     num_transforms=num_transforms, num_bases=num_bases)

    assert out.shape == (2, 8, output_dim), out.shape
    assert jnp.allclose(out, ref, atol=1e-5, rtol=1e-5), float(jnp.max(jnp.abs(out - ref)))

    print("KERNEL_OK")
</pallas_src>

<mosaic_0001>
module attributes {stable_mosaic.version = 11 : i64} {
  func.func @_decomp_packed_kernel(%arg0: i32, %arg1: memref<16x1xi32, #tpu.memory_space<vmem>>, %arg2: memref<16x32xf32, #tpu.memory_space<vmem>>, %arg3: memref<32x128xf32, #tpu.memory_space<vmem>>, %arg4: memref<16x32xf32, #tpu.memory_space<vmem>>) attributes {dimension_semantics = [#tpu.dimension_semantics<parallel>], iteration_bounds = array<i64: 1>, scalar_prefetch = 0 : i64, scratch_operands = 0 : i64, tpu.core_type = #tpu.core_type<tc>, window_params = [{transform_indices = @transform_0, window_bounds = array<i64: 16, 1>}, {transform_indices = @transform_1, window_bounds = array<i64: 16, 32>}, {pipeline_mode = #tpu.pipeline_mode<synchronous>, transform_indices = @transform_2, window_bounds = array<i64: 32, 128>}, {transform_indices = @transform_3, window_bounds = array<i64: 16, 32>}]} {
    %c0 = arith.constant 0 : index
    %c0_0 = arith.constant 0 : index
    %0 = vector.load %arg2[%c0, %c0_0] : memref<16x32xf32, #tpu.memory_space<vmem>>, vector<16x32xf32>
    %c0_1 = arith.constant 0 : index
    %c0_2 = arith.constant 0 : index
    %1 = vector.load %arg3[%c0_1, %c0_2] : memref<32x128xf32, #tpu.memory_space<vmem>>, vector<32x128xf32>
    %cst = arith.constant dense<0.000000e+00> : vector<16x128xf32>
    %2 = tpu.matmul %0, %1, %cst {dimension_numbers = #tpu.dot_dimension_numbers<[1], [0], [0], [1], [0, 0, 1, 1], [], []>} : vector<16x32xf32>, vector<32x128xf32>, vector<16x128xf32> -> vector<16x128xf32>
    %c0_3 = arith.constant 0 : index
    %c0_4 = arith.constant 0 : index
    %3 = vector.load %arg1[%c0_3, %c0_4] : memref<16x1xi32, #tpu.memory_space<vmem>>, vector<16x1xi32>
    %c0_i32 = arith.constant 0 : i32
    %4 = vector.broadcast %c0_i32 : i32 to vector<16x1xi32>
    %5 = arith.cmpi eq, %3, %4 : vector<16x1xi32>
    %6 = vector.extract_strided_slice %2 {offsets = [0, 0], sizes = [16, 32], strides = [1, 1]} : vector<16x128xf32> to vector<16x32xf32>
    %cst_5 = arith.constant 0.000000e+00 : f32
    %7 = vector.shape_cast %5 : vector<16x1xi1> to vector<16x1xi1>
    %8 = vector.broadcast %7 : vector<16x1xi1> to vector<16x32xi1>
    %9 = vector.broadcast %cst_5 : f32 to vector<16x32xf32>
    %10 = arith.select %8, %6, %9 : vector<16x32xi1>, vector<16x32xf32>
    %c1_i32 = arith.constant 1 : i32
    %11 = vector.broadcast %c1_i32 : i32 to vector<16x1xi32>
    %12 = arith.cmpi eq, %3, %11 : vector<16x1xi32>
    %13 = vector.extract_strided_slice %2 {offsets = [0, 32], sizes = [16, 32], strides = [1, 1]} : vector<16x128xf32> to vector<16x32xf32>
    %cst_6 = arith.constant 0.000000e+00 : f32
    %14 = vector.shape_cast %12 : vector<16x1xi1> to vector<16x1xi1>
    %15 = vector.broadcast %14 : vector<16x1xi1> to vector<16x32xi1>
    %16 = vector.broadcast %cst_6 : f32 to vector<16x32xf32>
    %17 = arith.select %15, %13, %16 : vector<16x32xi1>, vector<16x32xf32>
    %18 = arith.addf %10, %17 : vector<16x32xf32>
    %c2_i32 = arith.constant 2 : i32
    %19 = vector.broadcast %c2_i32 : i32 to vector<16x1xi32>
    %20 = arith.cmpi eq, %3, %19 : vector<16x1xi32>
    %21 = vector.extract_strided_slice %2 {offsets = [0, 64], sizes = [16, 32], strides = [1, 1]} : vector<16x128xf32> to vector<16x32xf32>
    %cst_7 = arith.constant 0.000000e+00 : f32
    %22 = vector.shape_cast %20 : vector<16x1xi1> to vector<16x1xi1>
    %23 = vector.broadcast %22 : vector<16x1xi1> to vector<16x32xi1>
    %24 = vector.broadcast %cst_7 : f32 to vector<16x32xf32>
    %25 = arith.select %23, %21, %24 : vector<16x32xi1>, vector<16x32xf32>
    %26 = arith.addf %18, %25 : vector<16x32xf32>
    %c3_i32 = arith.constant 3 : i32
    %27 = vector.broadcast %c3_i32 : i32 to vector<16x1xi32>
    %28 = arith.cmpi eq, %3, %27 : vector<16x1xi32>
    %29 = vector.extract_strided_slice %2 {offsets = [0, 96], sizes = [16, 32], strides = [1, 1]} : vector<16x128xf32> to vector<16x32xf32>
    %cst_8 = arith.constant 0.000000e+00 : f32
    %30 = vector.shape_cast %28 : vector<16x1xi1> to vector<16x1xi1>
    %31 = vector.broadcast %30 : vector<16x1xi1> to vector<16x32xi1>
    %32 = vector.broadcast %cst_8 : f32 to vector<16x32xf32>
    %33 = arith.select %31, %29, %32 : vector<16x32xi1>, vector<16x32xf32>
    %34 = arith.addf %26, %33 : vector<16x32xf32>
    %c0_9 = arith.constant 0 : index
    %c0_10 = arith.constant 0 : index
    %35 = vector.load %arg4[%c0_9, %c0_10] : memref<16x32xf32, #tpu.memory_space<vmem>>, vector<16x32xf32>
    tpu.vector_store %arg4[%c0_9, %c0_10], %34 {strides = array<i32>} : memref<16x32xf32, #tpu.memory_space<vmem>>, vector<16x32xf32>,
    return
  }
  func.func @transform_0(%arg0: i32) -> (i32, i32) {
    %c0_i32 = arith.constant 0 : i32
    %c0_i32_0 = arith.constant 0 : i32
    return %arg0, %c0_i32 : i32, i32
  }
  func.func @transform_1(%arg0: i32) -> (i32, i32) {
    %c0_i32 = arith.constant 0 : i32
    %c0_i32_0 = arith.constant 0 : i32
    return %arg0, %c0_i32 : i32, i32
  }
  func.func @transform_2(%arg0: i32) -> (i32, i32) {
    %c0_i32 = arith.constant 0 : i32
    %c0_i32_0 = arith.constant 0 : i32
    %c0_i32_1 = arith.constant 0 : i32
    return %c0_i32, %c0_i32_0 : i32, i32
  }
  func.func @transform_3(%arg0: i32) -> (i32, i32) {
    %c0_i32 = arith.constant 0 : i32
    %c0_i32_0 = arith.constant 0 : i32
    return %arg0, %c0_i32 : i32, i32
  }
}

</mosaic_0001>

<bundles_post_ra>
// kernel: tpu_custom_call.1
= control target key start
LH: loop header
LB: loop body
LE: loop exit
PB: predicated region body
PF: predicated region fallthrough
CT: control target
= control target key end

     0   :  { %8 = vsyncpa [#allocation3], 0  ;;  %s301_s0 = inlined_call_operand.vmem [shape: s32[16,1], index: 0, kind: input, shape index: {}]   ;;  %s302_s1 = inlined_call_operand.vmem [shape: f32[16,32], index: 1, kind: input, shape index: {}]   ;;  %s303_s2 = inlined_call_operand.hbm [shape: f32[32,128], index: 2, kind: input, shape index: {}]   ;;  %s304_s3 = inlined_call_operand.hbm [shape: f32[16,32], index: 3, kind: output, shape index: {}]  }
   0x1   :  { %9 = vsyncpa [#allocation4], 0  ;;  %s18_s14 = sshll.u32 %s303_s2, 4  ;;  %s245_s15 = smov [#allocation2]   ;;  %s19_s14 = int_to_ptr.hbm [resolvable:$true] %s18_s14 }
   0x2   :  { %s20_s16 = sshll.u32 %s245_s15, 4  ;;  %s246_s17 = smov 128   ;;  %s21_s16 = int_to_ptr.vmem [resolvable:$true] %s20_s16 }
   0x3   :  { %s247_s18 = smov 8  }
   0x4   :  { %26 = dma.hbm_to_vmem [thread:$0]  %s19_s14, 512, %s21_s16, [#allocation3], %s246_s17, %s246_s17, %s247_s18  }
   0x5   :  { %241 = dma.done.wait [#allocation3], 512  }
   0x6   :  { %242 = vsyncadd [#allocation3], 4294966784  ;;  %v248_v0 = vmov 0   ;;  %v36_v1 = vld [vmem:[#allocation2 + $0x18] sm:$0xff]  ;;  %v67_v2 = vld [vmem:[%s301_s0] sm:$0xff]  ;;  %vm37_vm5 = vcmask 261120  }
   0x7   :  { %191 = vset.pattern.permute.xlu1 %v248_v0  ;;  %190 = vset.pattern.permute.xlu0 %v248_v0  ;;  %vm107_vm0 = vcmp.eq.s32.totalorder %v67_v2, 2  ;;  %vm83_vm1 = vcmp.eq.s32.totalorder %v67_v2, 1  ;;  %v35_v3 = vld [vmem:[#allocation2 + $0x10] sm:$0xff]  ;;  %v68_v6 = vld [vmem:[%s301_s0 + $0x8] sm:$0xff]  ;;  %vm131_vm2 = vcmp.eq.s32.totalorder %v67_v2, 3  ;;  %v33_v9 = vld [vmem:[#allocation2] sm:$0xff] }
   0x8   :  { %192 = vset.pattern.permute.xlu2 %v248_v0  ;;  %56 = vmatpush.msra.mxu0 %v36_v1  ;;  %v109_v4 = vsel %vm107_vm0, 1, %v248_v0  ;;  %v85_v5 = vsel %vm83_vm1, 1, %v248_v0  ;;  %v34_v7 = vld [vmem:[#allocation2 + $0x8] sm:$0xff]  ;;  %v133_v8 = vsel %vm131_vm2, 1, %v248_v0  ;;  %vm108_vm3 = vcmp.eq.s32.totalorder %v68_v6, 2  ;;  %v31_v10 = vld [vmem:[%s302_s1] sm:$0xff] }
   0x9   :  { %178 = vmatpush.msra.mxu1 %v36_v1  ;;  %112 = vperm.xlu1 %191, %v109_v4   ;;  %vm84_vm4 = vcmp.eq.s32.totalorder %v68_v6, 1  ;;  %v32_v11 = vld [vmem:[%s302_s1 + $0x8] sm:$0xff]  ;;  %vm132_vm6 = vcmp.eq.s32.totalorder %v68_v6, 3  ;;  %v110_v12 = vsel %vm108_vm3, 1, %v248_v0  ;;  %vm70_vm7 = vcmp.eq.s32.totalorder %v68_v6, 0  ;;  %s249_s1 = smov 96  }
   0xa   :  { %88 = vperm.xlu0 %190, %v85_v5   ;;  %57 = vmatpush.msra.mxu0 %v35_v3  ;;  %v86_v13 = vsel %vm84_vm4, 1, %v248_v0  ;;  %v134_v14 = vsel %vm132_vm6, 1, %v248_v0  ;;  %vm69_vm8 = vcmp.eq.s32.totalorder %v67_v2, 0  ;;  %v72_v15 = vsel %vm70_vm7, 1, %v248_v0  ;;  %s250_s25 = smov 64   ;;  %s251_s26 = smov 32  }
   0xb   :  { %179 = vmatpush.msra.mxu1 %v35_v3  ;;  %136 = vperm.xlu2 %192, %v133_v8   ;;  %v71_v16 = vsel %vm69_vm8, 1, %v248_v0  ;;  %s252_s27 = smov [#allocation5]   ;;  %s163_s4 = sshll.u32 %s304_s3, 4  ;;  %s164_s4 = int_to_ptr.hbm [resolvable:$true] %s163_s4 }
   0xc   :  { %58 = vmatpush.msra.mxu0 %v34_v7  ;;  %s161_s28 = sshll.u32 %s252_s27, 4  ;;  %s162_s28 = int_to_ptr.vmem [resolvable:$true] %s161_s28 }
   0xd   :  { %180 = vmatpush.msra.mxu1 %v34_v7 }
   0xe   :  { %59 = vmatpush.msra.mxu0 %v33_v9 }
   0xf   :  { %181 = vmatpush.msra.mxu1 %v33_v9  ;;  %176 = vmatmul.msk.f32.vlgmr.msra.gmra.mxu0 %vm37_vm5, %v31_v10 }
  0x10   :  { %177 = vmatmul.msk.f32.vlgmr.msra.gmra.mxu1 %vm37_vm5, %v32_v11 }
  0x11   :  { %115 = vperm.xlu1 %191, %v110_v12  }
  0x12   :  { %91 = vperm.xlu0 %190, %v86_v13  }
  0x13   :  { %139 = vperm.xlu2 %192, %v134_v14  }
  0x19   :  { %77 = vperm.xlu1 %191, %v72_v15  }
  0x1a   :  { %74 = vperm.xlu0 %190, %v71_v16  }
  0x65   :  { %v137_v18 = vpop.permute.xlu2 %136 }
  0x66   :  { %vm141_vm12 = vcmp.eq.s32.totalorder %v137_v18, 1 }
  0x6d   :  { %v140_v26 = vpop.permute.xlu2 %139 }
  0x6e   :  { %vm142_vm13 = vcmp.eq.s32.totalorder %v140_v26, 1 }
  0x7b   :  { %v113_v19 = vpop.permute.xlu1 %112 }
  0x7c   :  { %v89_v17 = vpop.permute.xlu0 %88  ;;  %vm117_vm9 = vcmp.eq.s32.totalorder %v113_v19, 1 }
  0x7d   :  { %vm93_vm10 = vcmp.eq.s32.totalorder %v89_v17, 1 }
  0x83   :  { %v116_v27 = vpop.permute.xlu1 %115 }
  0x84   :  { %v92_v20 = vpop.permute.xlu0 %91  ;;  %vm118_vm14 = vcmp.eq.s32.totalorder %v116_v27, 1 }
  0x85   :  { %vm94_vm11 = vcmp.eq.s32.totalorder %v92_v20, 1 }
  0x8b   :  { %v78_v31 = vpop.permute.xlu1 %77 }
  0x8c   :  { %v61_v21 = vpop.f32.mrf.mxu0  ;;  %v75_v32 = vpop.permute.xlu0 %74  ;;  %vm80_vm15 = vcmp.eq.s32.totalorder %v78_v31, 1 }
  0x8d   :  { %v64_v22 = vpop.f32.mrf.mxu1  ;;  %v119_v24 = vsel %vm117_vm9, %v61_v21, 0.0  ;;  %v95_v25 = vsel %vm93_vm10, %v61_v21, 0.0  ;;  %v143_v28 = vsel %vm141_vm12, %v61_v21, 0.0  ;;  %vm79_vm0 = vcmp.eq.s32.totalorder %v75_v32, 1 }
  0x8e   :  { %v96_v23 = vsel %vm94_vm11, %v64_v22, 0.0  ;;  %123 = vrot.lane.b32.xlu1 %v119_v24, %s250_s25  ;;  %99 = vrot.lane.b32.xlu2 %v95_v25, %s249_s1  ;;  %v144_v29 = vsel %vm142_vm13, %v64_v22, 0.0  ;;  %v120_v30 = vsel %vm118_vm14, %v64_v22, 0.0  ;;  %v82_v36 = vsel %vm80_vm15, %v64_v22, 0.0 }
  0x8f   :  { %101 = vrot.lane.b32.xlu0 %v96_v23, %s249_s1  ;;  %v81_v38 = vsel %vm79_vm0, %v61_v21, 0.0 }
  0x96   :  { %149 = vrot.lane.b32.xlu1 %v144_v29, %s251_s26  ;;  %125 = vrot.lane.b32.xlu2 %v120_v30, %s250_s25 }
  0x97   :  { %147 = vrot.lane.b32.xlu0 %v143_v28, %s251_s26 }
  0xe8   :  { %v100_v33 = vpop.permute.xlu2 %99 }
  0xe9   :  { %v105_v39 = vadd.f32 %v100_v33, %v81_v38 }
  0xf0   :  { %v126_v40 = vpop.permute.xlu2 %125 }
 0x100   :  { %v124_v35 = vpop.permute.xlu1 %123 }
 0x101   :  { %v102_v34 = vpop.permute.xlu0 %101  ;;  %v129_v41 = vadd.f32 %v124_v35, %v105_v39 }
 0x102   :  { %v106_v37 = vadd.f32 %v102_v34, %v82_v36 }
 0x104   :  { %v130_v42 = vadd.f32 %v126_v40, %v106_v37 }
 0x108   :  { %v150_v44 = vpop.permute.xlu1 %149 }
 0x109   :  { %v148_v43 = vpop.permute.xlu0 %147  ;;  %v154_v46 = vadd.f32 %v150_v44, %v130_v42 }
 0x10a   :  { %v153_v45 = vadd.f32 %v148_v43, %v129_v41 }
 0x10b   :  { %156 = vst.msk [vmem:[#allocation5 + $0x8] sm:$0xff] %vm37_vm5, %v154_v46 }
 0x10c   :  { %155 = vst.msk [vmem:[#allocation5] sm:$0xff] %vm37_vm5, %v153_v45 }
 0x10d   :  { %169 = dma.vmem_to_hbm [thread:$0]  %s162_s28, 256, %s164_s4, [#allocation4], %s246_s17, %s246_s17, %s247_s18  }
 0x10e   :  { %243 = dma.done.wait [#allocation4], 256  }
 0x10f   :  { %244 = vsyncadd [#allocation4], 4294967040 }
 0x110   :  { %174 = vsyncpa [#allocation3], 1 }
 0x111   :  { %175 = vsyncpa [#allocation4], 1 }

</bundles_post_ra>
